<compile_context>
chip_gen: v5e
topology: v5e:2x2
jax: 0.10.0
libtpu: 0.0.40
codegen_flags: <defaults>
</compile_context>

<pallas_src>
import math

import jax
import jax.numpy as jnp
from jax.experimental import pallas as pl
from jax.experimental.pallas import tpu as pltpu


def _make_kernel(K, K_pad):
    """Build the kernel body. K = true contraction dim, K_pad = 128-multiple."""
    if K == K_pad:
        def kernel(x_ref, w_ref, pos_ref, o_ref):
            y = jnp.dot(x_ref[...], w_ref[...], preferred_element_type=jnp.float32)
            o_ref[...] = (y + pos_ref[...]).astype(o_ref.dtype)
        return kernel, False

    def kernel(x_ref, w_ref, pos_ref, o_ref, xp_ref):
        # Zero-pad the ragged K axis inside VMEM (no HBM inflation):
        # full unmasked clear, then masked write of the K real lanes.
        xp_ref[...] = jnp.zeros_like(xp_ref)
        xp_ref[:, :K] = x_ref[...]
        y = jnp.dot(xp_ref[...], w_ref[...], preferred_element_type=jnp.float32)
        o_ref[...] = (y + pos_ref[...]).astype(o_ref.dtype)
    return kernel, True


def _images_per_tile(batch, n_patches, max_rows=1024):
    """Whole images per row tile.

    Tiling in units of whole images lets pos_embed be pre-tiled to exactly one
    row tile and stay VMEM resident via a constant index_map.  reps*n_patches
    is forced to a multiple of 16 (bf16 sublane packing / (8,128) block rule),
    and the padded batch is always an exact multiple of reps.
    """
    reps0 = 16 // math.gcd(n_patches, 16)            # min images for 16-aligned rows
    b_cap = ((batch + reps0 - 1) // reps0) * reps0   # never exceed the padded batch
    reps = max(reps0, (max_rows // n_patches) // reps0 * reps0)
    return min(reps, b_cap)


def patch_embed(x, conv_w, conv_b, pos_embed, patch_size,
                *, compute_dtype=jnp.bfloat16, max_rows=1024):
    """x: (B, C, H, W) NCHW; conv_w: (D, C, p, p); conv_b: (D,);
    pos_embed: (1, N, D).  Returns (B, N, D) in x.dtype."""
    B, C, H, W = x.shape
    D = conv_w.shape[0]
    p = patch_size
    gh, gw = H // p, W // p
    N = gh * gw
    K = C * p * p
    K_pad = pl.cdiv(K, 128) * 128

    reps = _images_per_tile(B, N, max_rows)      # whole images per tile
    tm = reps * N                                # rows per tile (multiple of 16)
    B_pad = pl.cdiv(B, reps) * reps
    M, M_pad = B * N, B_pad * N
    nt = M_pad // tm                             # exact grid size

    # --- glue: non-overlapping patch extraction (== Conv2d stride=kernel). ---
    # One fused XLA transpose+cast producing the bf16 (M, K) patch matrix; the
    # ragged K axis is NOT padded here (padding happens in-kernel, in VMEM).
    # TODO(synk): fuse patch extraction into the kernel (grid over patch-row
    # slabs of x) to remove this extra HBM round trip at large ViT sizes.
    patches = x.reshape(B, C, gh, p, gw, p).transpose(0, 2, 4, 1, 3, 5)
    patches = patches.reshape(M, K).astype(compute_dtype)
    if M_pad != M:
        patches = jnp.pad(patches, ((0, M_pad - M), (0, 0)))

    # Conv weight (D, C, p, p) -> (K, D); zero-pad K rows (tiny, stays resident).
    w = conv_w.reshape(D, K).T
    if K_pad != K:
        w = jnp.pad(w, ((0, K_pad - K), (0, 0)))
    w = w.astype(compute_dtype)

    # Positional embedding with the conv bias folded in, pre-tiled to one row
    # tile (reps whole images) so a constant index_map keeps it resident.
    pos = (pos_embed.reshape(N, D) + conv_b[None, :]).astype(jnp.float32)
    pos_tile = jnp.tile(pos, (reps, 1))          # (tm, D)

    kernel, needs_scratch = _make_kernel(K, K_pad)
    scratch = [pltpu.VMEM((tm, K_pad), compute_dtype)] if needs_scratch else []

    out2d = pl.pallas_call(
        kernel,
        out_shape=jax.ShapeDtypeStruct((M_pad, D), x.dtype),
        grid_spec=pltpu.PrefetchScalarGridSpec(
            num_scalar_prefetch=0,
            grid=(nt,),
            in_specs=[
                # patches: (tm, K) row tile; ragged K is the full last dim
                # (allowed) so no HBM padding is needed.
                pl.BlockSpec((tm, K), lambda i: (i, 0)),
                # weight: constant block index -> DMA'd once, VMEM resident.
                # TODO(synk): pipeline_mode=pl.Buffered(1) to drop the second
                # buffer of this constant block on v7x (64 MiB VMEM).
                pl.BlockSpec((K_pad, D), lambda i: (0, 0)),
                # pos(+bias): pre-tiled to one row tile, constant -> resident.
                pl.BlockSpec((tm, D), lambda i: (0, 0)),
            ],
            out_specs=pl.BlockSpec((tm, D), lambda i: (i, 0)),
            scratch_shapes=scratch,
        ),
        compiler_params=pltpu.CompilerParams(
            dimension_semantics=("parallel",),
            vmem_limit_bytes=48 * 1024 * 1024,
        ),
    )(patches, w, pos_tile)

    if M_pad != M:
        out2d = out2d[:M]
    return out2d.reshape(B, N, D)


if __name__ == "__main__":
    # Module defaults: img_size=28, patch_size=7, in_ch=1, embed_dim=128.
    img_size, patch_size, in_ch, embed_dim = 28, 7, 1, 128
    n_patches = (img_size // patch_size) ** 2  # 16
    batch = 2

    key = jax.random.PRNGKey(0)
    k_x, k_w, k_b, k_pos = jax.random.split(key, 4)

    x = jax.random.normal(k_x, (batch, in_ch, img_size, img_size), dtype=jnp.float32)
    conv_w = jax.random.normal(k_w, (embed_dim, in_ch, patch_size, patch_size),
                               dtype=jnp.float32) * 0.02
    conv_b = jax.random.normal(k_b, (embed_dim,), dtype=jnp.float32) * 0.02
    pos_embed = jax.random.normal(k_pos, (1, n_patches, embed_dim), dtype=jnp.float32)

    out = patch_embed(x, conv_w, conv_b, pos_embed, patch_size)
    out = jax.block_until_ready(out)

    # Pure-JAX f32 reference (conv with stride == kernel is a patch matmul).
    B, C, H, W = x.shape
    p = patch_size
    gh = H // p
    patches_ref = x.reshape(B, C, gh, p, gh, p).transpose(0, 2, 4, 1, 3, 5)
    patches_ref = patches_ref.reshape(B, n_patches, C * p * p)
    ref = patches_ref @ conv_w.reshape(embed_dim, -1).T + conv_b + pos_embed

    assert out.shape == (batch, n_patches, embed_dim), out.shape
    # bf16 MXU operands with f32 accumulation -> loosened tolerance.
    max_err = float(jnp.max(jnp.abs(out - ref)))
    assert jnp.allclose(out, ref, atol=2e-2, rtol=2e-2), max_err

    print("KERNEL_OK")
</pallas_src>

<mosaic_0001>
module attributes {stable_mosaic.version = 11 : i64} {
  func.func @kernel(%arg0: i32, %arg1: memref<32x49xbf16, #tpu.memory_space<vmem>>, %arg2: memref<128x128xbf16, #tpu.memory_space<vmem>>, %arg3: memref<32x128xf32, #tpu.memory_space<vmem>>, %arg4: memref<32x128xf32, #tpu.memory_space<vmem>>, %arg5: memref<32x128xbf16, #tpu.memory_space<vmem>>) attributes {dimension_semantics = [#tpu.dimension_semantics<parallel>], iteration_bounds = array<i64: 1>, scalar_prefetch = 0 : i64, scratch_operands = 1 : i64, tpu.core_type = #tpu.core_type<tc>, window_params = [{transform_indices = @transform_0, window_bounds = array<i64: 32, 49>}, {pipeline_mode = #tpu.pipeline_mode<synchronous>, transform_indices = @transform_1, window_bounds = array<i64: 128, 128>}, {pipeline_mode = #tpu.pipeline_mode<synchronous>, transform_indices = @transform_2, window_bounds = array<i64: 32, 128>}, {transform_indices = @transform_3, window_bounds = array<i64: 32, 128>}]} {
    %cst = arith.constant 0.000000e+00 : bf16
    %0 = vector.broadcast %cst : bf16 to vector<32x128xbf16>
    %c0 = arith.constant 0 : index
    %c0_0 = arith.constant 0 : index
    %1 = vector.load %arg5[%c0, %c0_0] : memref<32x128xbf16, #tpu.memory_space<vmem>>, vector<32x128xbf16>
    tpu.vector_store %arg5[%c0, %c0_0], %0 {strides = array<i32>} : memref<32x128xbf16, #tpu.memory_space<vmem>>, vector<32x128xbf16>,
    %c0_1 = arith.constant 0 : index
    %c0_2 = arith.constant 0 : index
    %2 = vector.load %arg1[%c0_1, %c0_2] : memref<32x49xbf16, #tpu.memory_space<vmem>>, vector<32x49xbf16>
    %c0_3 = arith.constant 0 : index
    %c0_4 = arith.constant 0 : index
    %3 = vector.load %arg5[%c0_3, %c0_4] : memref<32x128xbf16, #tpu.memory_space<vmem>>, vector<32x49xbf16>
    tpu.vector_store %arg5[%c0_3, %c0_4], %2 {strides = array<i32>} : memref<32x128xbf16, #tpu.memory_space<vmem>>, vector<32x49xbf16>,
    %c0_5 = arith.constant 0 : index
    %c0_6 = arith.constant 0 : index
    %4 = vector.load %arg5[%c0_5, %c0_6] : memref<32x128xbf16, #tpu.memory_space<vmem>>, vector<32x128xbf16>
    %c0_7 = arith.constant 0 : index
    %c0_8 = arith.constant 0 : index
    %5 = vector.load %arg2[%c0_7, %c0_8] : memref<128x128xbf16, #tpu.memory_space<vmem>>, vector<128x128xbf16>
    %cst_9 = arith.constant dense<0.000000e+00> : vector<32x128xf32>
    %6 = tpu.matmul %4, %5, %cst_9 {dimension_numbers = #tpu.dot_dimension_numbers<[1], [0], [0], [1], [0, 0, 1, 1], [], []>} : vector<32x128xbf16>, vector<128x128xbf16>, vector<32x128xf32> -> vector<32x128xf32>
    %c0_10 = arith.constant 0 : index
    %c0_11 = arith.constant 0 : index
    %7 = vector.load %arg3[%c0_10, %c0_11] : memref<32x128xf32, #tpu.memory_space<vmem>>, vector<32x128xf32>
    %8 = arith.addf %6, %7 : vector<32x128xf32>
    %c0_12 = arith.constant 0 : index
    %c0_13 = arith.constant 0 : index
    %9 = vector.load %arg4[%c0_12, %c0_13] : memref<32x128xf32, #tpu.memory_space<vmem>>, vector<32x128xf32>
    tpu.vector_store %arg4[%c0_12, %c0_13], %8 {strides = array<i32>} : memref<32x128xf32, #tpu.memory_space<vmem>>, vector<32x128xf32>,
    return
  }
  func.func @transform_0(%arg0: i32) -> (i32, i32) {
    %c0_i32 = arith.constant 0 : i32
    %c0_i32_0 = arith.constant 0 : i32
    return %arg0, %c0_i32 : i32, i32
  }
  func.func @transform_1(%arg0: i32) -> (i32, i32) {
    %c0_i32 = arith.constant 0 : i32
    %c0_i32_0 = arith.constant 0 : i32
    %c0_i32_1 = arith.constant 0 : i32
    return %c0_i32, %c0_i32_0 : i32, i32
  }
  func.func @transform_2(%arg0: i32) -> (i32, i32) {
    %c0_i32 = arith.constant 0 : i32
    %c0_i32_0 = arith.constant 0 : i32
    %c0_i32_1 = arith.constant 0 : i32
    return %c0_i32, %c0_i32_0 : i32, i32
  }
  func.func @transform_3(%arg0: i32) -> (i32, i32) {
    %c0_i32 = arith.constant 0 : i32
    %c0_i32_0 = arith.constant 0 : i32
    return %arg0, %c0_i32 : i32, i32
  }
}

</mosaic_0001>

<bundles_post_ra>
// kernel: tpu_custom_call.1
= control target key start
LH: loop header
LB: loop body
LE: loop exit
PB: predicated region body
PF: predicated region fallthrough
CT: control target
= control target key end

     0   :  { %8 = vsyncpa [#allocation4], 0  ;;  %s419_s0 = inlined_call_operand.hbm [shape: bf16[32,49], index: 0, kind: input, shape index: {}]   ;;  %s420_s1 = inlined_call_operand.hbm [shape: bf16[128,128], index: 1, kind: input, shape index: {}]   ;;  %s421_s2 = inlined_call_operand.hbm [shape: f32[32,128], index: 2, kind: input, shape index: {}]   ;;  %s422_s3 = inlined_call_operand.hbm [shape: f32[32,128], index: 3, kind: output, shape index: {}]  }
   0x1   :  { %9 = vsyncpa [#allocation7], 0 }
   0x2   :  { %10 = vsyncpa [#allocation5], 0  ;;  %s28_s14 = sshll.u32 %s420_s1, 4  ;;  %s372_s15 = smov [#allocation6]   ;;  %s29_s14 = int_to_ptr.hbm [resolvable:$true] %s28_s14 }
   0x3   :  { %s30_s16 = sshll.u32 %s372_s15, 4  ;;  %s15_s19 = sshll.u32 %s419_s0, 4  ;;  %s31_s16 = int_to_ptr.vmem [resolvable:$true] %s30_s16  ;;  %s16_s19 = int_to_ptr.hbm [resolvable:$true] %s15_s19 }
   0x4   :  { %s373_s20 = smov 64   ;;  %s374_s21 = smov 4  }
   0x5   :  { %36 = dma.hbm_to_vmem [thread:$0]  %s29_s14, 1024, %s31_s16, [#allocation7], %s373_s20, %s373_s20, %s374_s21  }
   0x6   :  { %s375_s22 = smov [#allocation3]   ;;  %s41_s26 = sshll.u32 %s421_s2, 4  ;;  %s42_s26 = int_to_ptr.hbm [resolvable:$true] %s41_s26 }
   0x7   :  { %s17_s23 = sshll.u32 %s375_s22, 4  ;;  %s376_s1 = smov [#allocation8]   ;;  %s18_s23 = int_to_ptr.vmem [resolvable:$true] %s17_s23 }
   0x8   :  { %23 = dma.hbm_to_vmem [thread:$0]  %s16_s19, 256, %s18_s23, [#allocation4], %s373_s20, %s373_s20, %s374_s21  }
   0x9   :  { %s43_s27 = sshll.u32 %s376_s1, 4  ;;  %s377_s28 = smov 128   ;;  %s44_s27 = int_to_ptr.vmem [resolvable:$true] %s43_s27 }
   0xa   :  { %s378_s29 = smov 8  }
   0xb   :  { %49 = dma.hbm_to_vmem [thread:$0]  %s42_s26, 512, %s44_s27, [#allocation7], %s377_s28, %s377_s28, %s378_s29  }
   0xc   :  { %366 = dma.done.wait [#allocation4], 256  }
   0xd   :  { %367 = vsyncadd [#allocation4], 4294967040 }
   0xe   :  { %368 = dma.done.wait [#allocation7], 1536  }
   0xf   :  { %369 = vsyncadd [#allocation7], 4294965760  ;;  %v379_v0 = vmov 0   ;;  %v252_v1 = vld [vmem:[#allocation6 + $0x38] sm:$0xff]  ;;  %vm71_vm0 = vcmask 396288   ;;  %v251_v2 = vld [vmem:[#allocation6 + $0x30] sm:$0xff] }
  0x10   :  { %63 = vst [vmem:[#allocation2] sm:$0xf] %v379_v0  ;;  %160 = vmatpush.bf16.msra.mxu0 %v252_v1  ;;  %253 = vmatpush.bf16.msra.mxu1 %v252_v1  ;;  %v67_v3 = vld [vmem:[#allocation3] sm:$0xf]  ;;  %v68_v4 = vld [vmem:[#allocation3 + $0x4] sm:$0xf] }
  0x11   :  { %64 = vst [vmem:[#allocation2 + $0x4] sm:$0xf] %v379_v0  ;;  %v69_v5 = vld [vmem:[#allocation3 + $0x8] sm:$0xf]  ;;  %v70_v6 = vld [vmem:[#allocation3 + $0xc] sm:$0xf] }
  0x12   :  { %65 = vst [vmem:[#allocation2 + $0x8] sm:$0xf] %v379_v0  ;;  %v250_v7 = vld [vmem:[#allocation6 + $0x28] sm:$0xff]  ;;  %v249_v8 = vld [vmem:[#allocation6 + $0x20] sm:$0xff]  ;;  %v248_v9 = vld [vmem:[#allocation6 + $0x18] sm:$0xff]  ;;  %s380_s0 = smov [#allocation9]  }
  0x13   :  { %66 = vst [vmem:[#allocation2 + $0xc] sm:$0xf] %v379_v0  ;;  %v247_v10 = vld [vmem:[#allocation6 + $0x10] sm:$0xff]  ;;  %v246_v11 = vld [vmem:[#allocation6 + $0x8] sm:$0xff]  ;;  %v245_v12 = vld [vmem:[#allocation6] sm:$0xff]  ;;  %s187_s2 = sshll.u32 %s380_s0, 4  ;;  %s188_s2 = int_to_ptr.vmem [resolvable:$true] %s187_s2 }
  0x14   :  { %72 = vst.msk [vmem:[#allocation2] sm:$0xf] %vm71_vm0, %v67_v3  ;;  %161 = vmatpush.bf16.msra.mxu0 %v251_v2  ;;  %254 = vmatpush.bf16.msra.mxu1 %v251_v2  ;;  %v96_v15 = vld [vmem:[#allocation8] sm:$0xff]  ;;  %v98_v16 = vld [vmem:[#allocation8 + $0x10] sm:$0xff]  ;;  %v97_v21 = vld [vmem:[#allocation8 + $0x8] sm:$0xff]  ;;  %s189_s5 = sshll.u32 %s422_s3, 4  ;;  %s190_s5 = int_to_ptr.hbm [resolvable:$true] %s189_s5 }
  0x15   :  { %73 = vst.msk [vmem:[#allocation2 + $0x4] sm:$0xf] %vm71_vm0, %v68_v4  ;;  %v99_v22 = vld [vmem:[#allocation8 + $0x18] sm:$0xff] }
  0x16   :  { %74 = vst.msk [vmem:[#allocation2 + $0x8] sm:$0xf] %vm71_vm0, %v69_v5 }
  0x17   :  { %75 = vst.msk [vmem:[#allocation2 + $0xc] sm:$0xf] %vm71_vm0, %v70_v6 }
  0x18   :  { %162 = vmatpush.bf16.msra.mxu0 %v250_v7  ;;  %255 = vmatpush.bf16.msra.mxu1 %v250_v7 }
  0x1c   :  { %163 = vmatpush.bf16.msra.mxu0 %v249_v8  ;;  %256 = vmatpush.bf16.msra.mxu1 %v249_v8  ;;  %v243_v13 = vld [vmem:[#allocation2] sm:$0xff] }
  0x1e   :  { %v244_v14 = vld [vmem:[#allocation2 + $0x8] sm:$0xff] }
  0x20   :  { %164 = vmatpush.bf16.msra.mxu0 %v248_v9  ;;  %257 = vmatpush.bf16.msra.mxu1 %v248_v9 }
  0x24   :  { %165 = vmatpush.bf16.msra.mxu0 %v247_v10  ;;  %258 = vmatpush.bf16.msra.mxu1 %v247_v10 }
  0x28   :  { %166 = vmatpush.bf16.msra.mxu0 %v246_v11  ;;  %259 = vmatpush.bf16.msra.mxu1 %v246_v11 }
  0x2c   :  { %167 = vmatpush.bf16.msra.mxu0 %v245_v12  ;;  %260 = vmatpush.bf16.msra.mxu1 %v245_v12 }
  0x2f   :  { %168 = vmatmul.bf16.vlgmr.msra.gmra.mxu0 %v243_v13  ;;  %173 = vmatmul.bf16.vlgmr.msra.gmra.mxu1 %v244_v14 }
  0xac   :  { %v169_v17 = vpop.f32.mrf.mxu0  ;;  %v174_v18 = vpop.f32.mrf.mxu1 }
  0xad   :  { %v170_v19 = vadd.f32 %v169_v17, %v96_v15  ;;  %v175_v20 = vadd.f32 %v174_v18, %v98_v16 }
  0xaf   :  { %179 = vst [vmem:[#allocation9] sm:$0xff] %v170_v19 }
  0xb0   :  { %181 = vst [vmem:[#allocation9 + $0x10] sm:$0xff] %v175_v20 }
  0xb4   :  { %v171_v23 = vpop.f32.mrf.mxu0  ;;  %v176_v24 = vpop.f32.mrf.mxu1 }
  0xb5   :  { %v172_v25 = vadd.f32 %v171_v23, %v97_v21  ;;  %v177_v26 = vadd.f32 %v176_v24, %v99_v22 }
  0xb7   :  { %180 = vst [vmem:[#allocation9 + $0x8] sm:$0xff] %v172_v25 }
  0xb8   :  { %182 = vst [vmem:[#allocation9 + $0x18] sm:$0xff] %v177_v26 }
  0xb9   :  { %195 = dma.vmem_to_hbm [thread:$0]  %s188_s2, 512, %s190_s5, [#allocation5], %s377_s28, %s377_s28, %s378_s29  }
  0xba   :  { %370 = dma.done.wait [#allocation5], 512  }
  0xbb   :  { %371 = vsyncadd [#allocation5], 4294966784 }
  0xbc   :  { %200 = vsyncpa [#allocation4], 1 }
  0xbd   :  { %201 = vsyncpa [#allocation7], 1 }
  0xbe   :  { %202 = vsyncpa [#allocation5], 1 }

</bundles_post_ra>
